<compile_context>
chip_gen: v6e
topology: v6e:2x2x1
jax: 0.10.0
libtpu: 0.0.40
codegen_flags: <defaults>
</compile_context>

<pallas_src>
import functools

import jax
import jax.numpy as jnp
from jax import lax
from jax.experimental import pallas as pl
from jax.experimental.pallas import tpu as pltpu

N = 64          # nodes per graph
IN_FEATS = 32
OUT_FEATS = 16
NUM_HEADS = 2
NEG_SLOPE = 0.2
BATCH = 8       # graphs streamed through the grid


def gat_kernel(x_ref, w_ref, al_mat_ref, ar_mat_ref, bias_ref, mask_ref, out_ref,
               *, num_heads, out_feats):
    """One graph per grid step.

    x_ref:      (N, in_feats)  f32
    w_ref:      (in_feats, H*F) f32   grid-resident
    al_mat_ref: (H, H*F)       f32   grid-resident (a_l packed per head block)
    ar_mat_ref: (H*F, H)       f32   grid-resident (a_r packed per head block)
    bias_ref:   (1, H*F)       f32   grid-resident
    mask_ref:   (N, N)         bf16  additive mask: 0 on-edge, ~-1e30 off-edge
    out_ref:    (N, H*F)       f32
    """
    x = x_ref[...]
    w = w_ref[...]

    # fc: (N, in_feats) @ (in_feats, H*F) on the MXU, f32 accumulation.
    feat = jnp.dot(x, w, preferred_element_type=jnp.float32)            # (N, H*F)

    # Attention projections for ALL heads via two small MXU matmuls (kept from the
    # validated previous version; fusing them saves one tiny push but would need an
    # XLU transpose of the (N,H) src term into a (H,N) row — not worth the risk here):
    #   el_all[h, u] = <feat[u, h-block], a_l[h]>   -> (H, N)  src term, row per head
    #   er_all[v, h] = <feat[v, h-block], a_r[h]>   -> (N, H)  dst term, column per head
    el_all = lax.dot_general(al_mat_ref[...], feat,
                             (((1,), (1,)), ((), ())),
                             preferred_element_type=jnp.float32)        # (H, N)
    er_all = jnp.dot(feat, ar_mat_ref[...],
                     preferred_element_type=jnp.float32)                # (N, H)

    # Additive off-edge mask, upcast from bf16 once, shared by both heads.
    mask_add = mask_ref[...].astype(jnp.float32)                        # (N, N)

    head_outs = []
    for h in range(num_heads):                                          # static unroll (H=2)
        feat_h = feat[:, h * out_feats:(h + 1) * out_feats]             # (N, F)
        # scores[dst, src] = leaky_relu(er[dst] + el[src]) + mask_add[dst, src]
        s = er_all[:, h:h + 1] + el_all[h:h + 1, :]                     # (N, N)
        s = jnp.maximum(s, NEG_SLOPE * s)                               # leaky_relu
        s = s + mask_add                                                # off-edge -> ~-1e30
        # Unnormalized softmax: every row has a self-loop, so s_max is finite and
        # off-edge entries underflow to exactly 0.0 after the max subtraction.
        s_max = jnp.max(s, axis=-1, keepdims=True)                      # (N, 1)
        p = jnp.exp(s - s_max)                                          # (N, N)
        denom = jnp.sum(p, axis=-1, keepdims=True)                      # (N, 1), >= 1
        # Aggregate first (MXU), normalize the (N, F) result afterwards with an EXACT
        # reciprocal of the single-vreg denominator (no approx -> tight tolerance).
        out_h = jnp.dot(p, feat_h, preferred_element_type=jnp.float32)  # (N, F)
        head_outs.append(out_h * (1.0 / denom))

    # Single store of the whole (N, H*F) block; bias added once.
    # TODO(synk): H*F = 32 < 128 lanes => masked vst; for throughput workloads stack
    # graphs along rows (block-diagonal batched graph) so fc/aggregation matmuls reach
    # M >= 256 and the output slab becomes lane-dense.
    out_ref[...] = jnp.concatenate(head_outs, axis=1) + bias_ref[...]


def _pack_attn(attn_l, attn_r, num_heads, out_feats):
    """One-time parameter repack (layout plumbing only): each head's attention vector
    goes into its head block so el/er become plain matmuls against the fused (N, H*F)
    feature tensor inside the kernel."""
    hf = num_heads * out_feats
    al_mat = jnp.zeros((num_heads, hf), dtype=jnp.float32)               # (H, H*F)
    ar_mat = jnp.zeros((hf, num_heads), dtype=jnp.float32)               # (H*F, H)
    for h in range(num_heads):
        al_mat = al_mat.at[h, h * out_feats:(h + 1) * out_feats].set(attn_l[h])
        ar_mat = ar_mat.at[h * out_feats:(h + 1) * out_feats, h].set(attn_r[h])
    return al_mat, ar_mat


def gat_conv_flatten(x, w, attn_l, attn_r, bias, adj):
    """x: (B, N, in_feats), adj: (B, N, N) with adj[b, dst, src]. Returns (B, N, H*F)."""
    b, n, _ = x.shape
    hf = w.shape[1]
    al_mat, ar_mat = _pack_attn(attn_l, attn_r, NUM_HEADS, OUT_FEATS)

    # Additive edge mask precomputed once in the wrapper (kills the in-kernel compare
    # and both selects) and shipped as bf16: adj/mask is the largest input (N^2) and
    # the kernel never needs it at f32 precision.
    mask_add = ((adj > 0.0).astype(jnp.float32) - 1.0) * jnp.float32(1e30)
    mask_add = mask_add.astype(jnp.bfloat16)                             # (B, N, N)

    kernel = functools.partial(gat_kernel, num_heads=NUM_HEADS, out_feats=OUT_FEATS)
    resident = lambda i: (0, 0)   # weights stay in VMEM across the whole grid

    # Per-graph working set is ~30 KiB, so one graph per grid step double-buffers
    # comfortably inside the default scoped VMEM on all of v5e/v6e/v7x.
    # TODO(synk): for large N (size the tiles for v7x's 32 MiB scoped / 64 MiB physical
    # VMEM, not v5e/v6e's 128 MiB) switch to a (graph, dst_tile, src_tile) grid with a
    # flash-style online softmax (reduction axis last, "arbitrary"), set
    # vmem_limit_bytes explicitly, and consider pl.Buffered(3) on the adj/src stream.
    return pl.pallas_call(
        kernel,
        out_shape=jax.ShapeDtypeStruct((b, n, hf), jnp.float32),
        grid=(b,),
        in_specs=[
            pl.BlockSpec((None, n, x.shape[2]), lambda i: (i, 0, 0)),    # x (streamed)
            pl.BlockSpec((w.shape[0], hf), resident),                    # W
            pl.BlockSpec((NUM_HEADS, hf), resident),                     # al_mat
            pl.BlockSpec((hf, NUM_HEADS), resident),                     # ar_mat
            pl.BlockSpec((1, hf), resident),                             # bias
            pl.BlockSpec((None, n, n), lambda i: (i, 0, 0)),             # mask (streamed, bf16)
        ],
        out_specs=pl.BlockSpec((None, n, hf), lambda i: (i, 0, 0)),
        compiler_params=pltpu.CompilerParams(
            # Independent graphs: shard the grid across both TensorCores on v7x.
            dimension_semantics=("parallel",),
        ),
    )(x, w, al_mat, ar_mat, bias, mask_add)


def gat_reference(x, w, attn_l, attn_r, bias, adj):
    """Pure-JAX reference mirroring DGL GATConv + flatten(1), batched over graphs."""
    b, n = x.shape[0], x.shape[1]
    feat = (x @ w).reshape(b, n, NUM_HEADS, OUT_FEATS)                   # (B, N, H, F)
    el = jnp.einsum("bnhf,hf->bnh", feat, attn_l)                        # src
    er = jnp.einsum("bnhf,hf->bnh", feat, attn_r)                        # dst
    s = er[:, :, None, :] + el[:, None, :, :]                            # (B, dst, src, H)
    s = jnp.where(s > 0, s, NEG_SLOPE * s)
    mask = (adj > 0)[..., None]
    s = jnp.where(mask, s, -1e30)
    s_max = jnp.max(s, axis=2, keepdims=True)
    p = jnp.where(mask, jnp.exp(s - s_max), 0.0)
    denom = jnp.maximum(jnp.sum(p, axis=2, keepdims=True), 1e-9)
    alpha = p / denom                                                    # (B, dst, src, H)
    out = jnp.einsum("bvuh,buhf->bvhf", alpha, feat)                     # (B, N, H, F)
    out = out + bias.reshape(1, 1, NUM_HEADS, OUT_FEATS)
    return out.reshape(b, n, NUM_HEADS * OUT_FEATS)


if __name__ == "__main__":
    key = jax.random.PRNGKey(0)
    kx, kw, kal, kar, kadj = jax.random.split(key, 5)

    # Deterministic synthetic parameters (shapes from GATConv(in_feats, out_feats, num_heads)).
    x = jax.random.normal(kx, (BATCH, N, IN_FEATS), dtype=jnp.float32)
    w = (jax.random.normal(kw, (IN_FEATS, NUM_HEADS * OUT_FEATS), dtype=jnp.float32)
         * (1.0 / jnp.sqrt(IN_FEATS)))
    attn_l = jax.random.normal(kal, (NUM_HEADS, OUT_FEATS), dtype=jnp.float32) * 0.1
    attn_r = jax.random.normal(kar, (NUM_HEADS, OUT_FEATS), dtype=jnp.float32) * 0.1
    bias = jnp.zeros((1, NUM_HEADS * OUT_FEATS), dtype=jnp.float32)

    # Random sparse directed graphs + self-loops (DGL GATConv requires no
    # zero-in-degree nodes; the kernel relies on this for a finite row max / denom >= 1).
    adj = (jax.random.uniform(kadj, (BATCH, N, N)) < 0.15).astype(jnp.float32)
    adj = jnp.maximum(adj, jnp.eye(N, dtype=jnp.float32)[None])          # adj[b, dst, src]
    assert bool(jnp.all(jnp.sum(adj, axis=-1) > 0)), "zero in-degree node violates contract"

    out = gat_conv_flatten(x, w, attn_l, attn_r, bias, adj)
    out = jax.block_until_ready(out)

    ref = gat_reference(x, w, attn_l, attn_r, bias, adj)
    assert out.shape == (BATCH, N, NUM_HEADS * OUT_FEATS)
    # Exact divide replaced the approx reciprocal, so the remaining slack only covers
    # MXU f32 multi-pass accumulation-order differences vs the XLA reference.
    assert jnp.allclose(out, ref, atol=5e-3, rtol=5e-3), "mismatch vs JAX reference"

    print("KERNEL_OK")
</pallas_src>

<mosaic_0001>
module attributes {stable_mosaic.version = 11 : i64} {
  func.func @gat_kernel(%arg0: i32, %arg1: memref<1x64x32xf32, #tpu.memory_space<vmem>>, %arg2: memref<32x32xf32, #tpu.memory_space<vmem>>, %arg3: memref<2x32xf32, #tpu.memory_space<vmem>>, %arg4: memref<32x2xf32, #tpu.memory_space<vmem>>, %arg5: memref<1x32xf32, #tpu.memory_space<vmem>>, %arg6: memref<1x64x64xbf16, #tpu.memory_space<vmem>>, %arg7: memref<1x64x32xf32, #tpu.memory_space<vmem>>) attributes {dimension_semantics = [#tpu.dimension_semantics<parallel>], iteration_bounds = array<i64: 8>, scalar_prefetch = 0 : i64, scratch_operands = 0 : i64, tpu.core_type = #tpu.core_type<tc>, window_params = [{transform_indices = @transform_0, window_bounds = array<i64: 1, 64, 32>}, {pipeline_mode = #tpu.pipeline_mode<synchronous>, transform_indices = @transform_1, window_bounds = array<i64: 32, 32>}, {pipeline_mode = #tpu.pipeline_mode<synchronous>, transform_indices = @transform_2, window_bounds = array<i64: 2, 32>}, {pipeline_mode = #tpu.pipeline_mode<synchronous>, transform_indices = @transform_3, window_bounds = array<i64: 32, 2>}, {pipeline_mode = #tpu.pipeline_mode<synchronous>, transform_indices = @transform_4, window_bounds = array<i64: 1, 32>}, {transform_indices = @transform_5, window_bounds = array<i64: 1, 64, 64>}, {transform_indices = @transform_6, window_bounds = array<i64: 1, 64, 32>}]} {
    %c0 = arith.constant 0 : index
    %c0_0 = arith.constant 0 : index
    %c0_1 = arith.constant 0 : index
    %0 = vector.load %arg1[%c0, %c0_0, %c0_1] : memref<1x64x32xf32, #tpu.memory_space<vmem>>, vector<1x64x32xf32>
    %1 = vector.shape_cast %0 : vector<1x64x32xf32> to vector<64x32xf32>
    %c0_2 = arith.constant 0 : index
    %c0_3 = arith.constant 0 : index
    %2 = vector.load %arg2[%c0_2, %c0_3] : memref<32x32xf32, #tpu.memory_space<vmem>>, vector<32x32xf32>
    %cst = arith.constant dense<0.000000e+00> : vector<64x32xf32>
    %3 = tpu.matmul %1, %2, %cst {dimension_numbers = #tpu.dot_dimension_numbers<[1], [0], [0], [1], [0, 0, 1, 1], [], []>} : vector<64x32xf32>, vector<32x32xf32>, vector<64x32xf32> -> vector<64x32xf32>
    %c0_4 = arith.constant 0 : index
    %c0_5 = arith.constant 0 : index
    %4 = vector.load %arg3[%c0_4, %c0_5] : memref<2x32xf32, #tpu.memory_space<vmem>>, vector<2x32xf32>
    %cst_6 = arith.constant dense<0.000000e+00> : vector<2x64xf32>
    %5 = tpu.matmul %4, %3, %cst_6 {dimension_numbers = #tpu.dot_dimension_numbers<[1], [1], [0], [0], [0, 0, 1, 0], [], []>} : vector<2x32xf32>, vector<64x32xf32>, vector<2x64xf32> -> vector<2x64xf32>
    %c0_7 = arith.constant 0 : index
    %c0_8 = arith.constant 0 : index
    %6 = vector.load %arg4[%c0_7, %c0_8] : memref<32x2xf32, #tpu.memory_space<vmem>>, vector<32x2xf32>
    %cst_9 = arith.constant dense<0.000000e+00> : vector<64x2xf32>
    %7 = tpu.matmul %3, %6, %cst_9 {dimension_numbers = #tpu.dot_dimension_numbers<[1], [0], [0], [1], [0, 0, 1, 1], [], []>} : vector<64x32xf32>, vector<32x2xf32>, vector<64x2xf32> -> vector<64x2xf32>
    %c0_10 = arith.constant 0 : index
    %c0_11 = arith.constant 0 : index
    %c0_12 = arith.constant 0 : index
    %8 = vector.load %arg6[%c0_10, %c0_11, %c0_12] : memref<1x64x64xbf16, #tpu.memory_space<vmem>>, vector<1x64x64xbf16>
    %9 = vector.shape_cast %8 : vector<1x64x64xbf16> to vector<64x64xbf16>
    %10 = arith.extf %9 : vector<64x64xbf16> to vector<64x64xf32>
    %11 = vector.extract_strided_slice %3 {offsets = [0, 0], sizes = [64, 16], strides = [1, 1]} : vector<64x32xf32> to vector<64x16xf32>
    %12 = vector.extract_strided_slice %7 {offsets = [0, 0], sizes = [64, 1], strides = [1, 1]} : vector<64x2xf32> to vector<64x1xf32>
    %13 = vector.extract_strided_slice %5 {offsets = [0, 0], sizes = [1, 64], strides = [1, 1]} : vector<2x64xf32> to vector<1x64xf32>
    %14 = vector.broadcast %12 : vector<64x1xf32> to vector<64x64xf32>
    %15 = vector.broadcast %13 : vector<1x64xf32> to vector<64x64xf32>
    %16 = arith.addf %14, %15 : vector<64x64xf32>
    %cst_13 = arith.constant 2.000000e-01 : f32
    %17 = vector.broadcast %cst_13 : f32 to vector<64x64xf32>
    %18 = arith.mulf %17, %16 : vector<64x64xf32>
    %19 = arith.maximumf %16, %18 : vector<64x64xf32>
    %20 = arith.addf %19, %10 : vector<64x64xf32>
    %cst_14 = arith.constant dense<0xFF800000> : vector<64xf32>
    %21 = vector.multi_reduction <maximumf>, %20, %cst_14 [1] : vector<64x64xf32> to vector<64xf32>
    %22 = vector.shape_cast %21 : vector<64xf32> to vector<64x1xf32>
    %23 = vector.broadcast %22 : vector<64x1xf32> to vector<64x64xf32>
    %24 = arith.subf %20, %23 : vector<64x64xf32>
    %25 = math.exp %24 : vector<64x64xf32>
    %cst_15 = arith.constant dense<0.000000e+00> : vector<64xf32>
    %26 = vector.multi_reduction <add>, %25, %cst_15 [1] : vector<64x64xf32> to vector<64xf32>
    %27 = vector.shape_cast %26 : vector<64xf32> to vector<64x1xf32>
    %cst_16 = arith.constant dense<0.000000e+00> : vector<64x16xf32>
    %28 = tpu.matmul %25, %11, %cst_16 {dimension_numbers = #tpu.dot_dimension_numbers<[1], [0], [0], [1], [0, 0, 1, 1], [], []>} : vector<64x64xf32>, vector<64x16xf32>, vector<64x16xf32> -> vector<64x16xf32>
    %cst_17 = arith.constant 1.000000e+00 : f32
    %29 = vector.broadcast %cst_17 : f32 to vector<64x1xf32>
    %30 = arith.divf %29, %27 : vector<64x1xf32>
    %31 = vector.broadcast %30 : vector<64x1xf32> to vector<64x16xf32>
    %32 = arith.mulf %28, %31 : vector<64x16xf32>
    %33 = vector.extract_strided_slice %3 {offsets = [0, 16], sizes = [64, 16], strides = [1, 1]} : vector<64x32xf32> to vector<64x16xf32>
    %34 = vector.extract_strided_slice %7 {offsets = [0, 1], sizes = [64, 1], strides = [1, 1]} : vector<64x2xf32> to vector<64x1xf32>
    %35 = vector.extract_strided_slice %5 {offsets = [1, 0], sizes = [1, 64], strides = [1, 1]} : vector<2x64xf32> to vector<1x64xf32>
    %36 = vector.broadcast %34 : vector<64x1xf32> to vector<64x64xf32>
    %37 = vector.broadcast %35 : vector<1x64xf32> to vector<64x64xf32>
    %38 = arith.addf %36, %37 : vector<64x64xf32>
    %cst_18 = arith.constant 2.000000e-01 : f32
    %39 = vector.broadcast %cst_18 : f32 to vector<64x64xf32>
    %40 = arith.mulf %39, %38 : vector<64x64xf32>
    %41 = arith.maximumf %38, %40 : vector<64x64xf32>
    %42 = arith.addf %41, %10 : vector<64x64xf32>
    %cst_19 = arith.constant dense<0xFF800000> : vector<64xf32>
    %43 = vector.multi_reduction <maximumf>, %42, %cst_19 [1] : vector<64x64xf32> to vector<64xf32>
    %44 = vector.shape_cast %43 : vector<64xf32> to vector<64x1xf32>
    %45 = vector.broadcast %44 : vector<64x1xf32> to vector<64x64xf32>
    %46 = arith.subf %42, %45 : vector<64x64xf32>
    %47 = math.exp %46 : vector<64x64xf32>
    %cst_20 = arith.constant dense<0.000000e+00> : vector<64xf32>
    %48 = vector.multi_reduction <add>, %47, %cst_20 [1] : vector<64x64xf32> to vector<64xf32>
    %49 = vector.shape_cast %48 : vector<64xf32> to vector<64x1xf32>
    %cst_21 = arith.constant dense<0.000000e+00> : vector<64x16xf32>
    %50 = tpu.matmul %47, %33, %cst_21 {dimension_numbers = #tpu.dot_dimension_numbers<[1], [0], [0], [1], [0, 0, 1, 1], [], []>} : vector<64x64xf32>, vector<64x16xf32>, vector<64x16xf32> -> vector<64x16xf32>
    %cst_22 = arith.constant 1.000000e+00 : f32
    %51 = vector.broadcast %cst_22 : f32 to vector<64x1xf32>
    %52 = arith.divf %51, %49 : vector<64x1xf32>
    %53 = vector.broadcast %52 : vector<64x1xf32> to vector<64x16xf32>
    %54 = arith.mulf %50, %53 : vector<64x16xf32>
    %55 = tpu.concatenate %32, %54 in 1 : vector<64x16xf32>, vector<64x16xf32> -> vector<64x32xf32>
    %c0_23 = arith.constant 0 : index
    %c0_24 = arith.constant 0 : index
    %56 = vector.load %arg5[%c0_23, %c0_24] : memref<1x32xf32, #tpu.memory_space<vmem>>, vector<1x32xf32>
    %57 = vector.broadcast %56 : vector<1x32xf32> to vector<64x32xf32>
    %58 = arith.addf %55, %57 : vector<64x32xf32>
    %c0_25 = arith.constant 0 : index
    %c0_26 = arith.constant 0 : index
    %c0_27 = arith.constant 0 : index
    %59 = vector.load %arg7[%c0_25, %c0_26, %c0_27] : memref<1x64x32xf32, #tpu.memory_space<vmem>>, vector<1x64x32xf32>
    %60 = vector.shape_cast %59 : vector<1x64x32xf32> to vector<64x32xf32>
    %61 = vector.shape_cast %58 : vector<64x32xf32> to vector<1x64x32xf32>
    tpu.vector_store %arg7[%c0_25, %c0_26, %c0_27], %61 {strides = array<i32>} : memref<1x64x32xf32, #tpu.memory_space<vmem>>, vector<1x64x32xf32>,
    return
  }
  func.func @transform_0(%arg0: i32) -> (i32, i32, i32) {
    %c0_i32 = arith.constant 0 : i32
    %c0_i32_0 = arith.constant 0 : i32
    %c0_i32_1 = arith.constant 0 : i32
    return %arg0, %c0_i32, %c0_i32_0 : i32, i32, i32
  }
  func.func @transform_1(%arg0: i32) -> (i32, i32) {
    %c0_i32 = arith.constant 0 : i32
    %c0_i32_0 = arith.constant 0 : i32
    %c0_i32_1 = arith.constant 0 : i32
    return %c0_i32, %c0_i32_0 : i32, i32
  }
  func.func @transform_2(%arg0: i32) -> (i32, i32) {
    %c0_i32 = arith.constant 0 : i32
    %c0_i32_0 = arith.constant 0 : i32
    %c0_i32_1 = arith.constant 0 : i32
    return %c0_i32, %c0_i32_0 : i32, i32
  }
  func.func @transform_3(%arg0: i32) -> (i32, i32) {
    %c0_i32 = arith.constant 0 : i32
    %c0_i32_0 = arith.constant 0 : i32
    %c0_i32_1 = arith.constant 0 : i32
    return %c0_i32, %c0_i32_0 : i32, i32
  }
  func.func @transform_4(%arg0: i32) -> (i32, i32) {
    %c0_i32 = arith.constant 0 : i32
    %c0_i32_0 = arith.constant 0 : i32
    %c0_i32_1 = arith.constant 0 : i32
    return %c0_i32, %c0_i32_0 : i32, i32
  }
  func.func @transform_5(%arg0: i32) -> (i32, i32, i32) {
    %c0_i32 = arith.constant 0 : i32
    %c0_i32_0 = arith.constant 0 : i32
    %c0_i32_1 = arith.constant 0 : i32
    return %arg0, %c0_i32, %c0_i32_0 : i32, i32, i32
  }
  func.func @transform_6(%arg0: i32) -> (i32, i32, i32) {
    %c0_i32 = arith.constant 0 : i32
    %c0_i32_0 = arith.constant 0 : i32
    %c0_i32_1 = arith.constant 0 : i32
    return %arg0, %c0_i32, %c0_i32_0 : i32, i32, i32
  }
}

</mosaic_0001>

<bundles_post_ra>
// kernel: tpu_custom_call.1
= control target key start
LH: loop header
LB: loop body
LE: loop exit
PB: predicated region body
PF: predicated region fallthrough
CT: control target
= control target key end

     0   :  { %s1798_s21 = smov 0   ;;  %s2204_s0 = inlined_call_operand.vmem [shape: f32[8,64,32], index: 0, kind: input, shape index: {}]   ;;  %s2205_s1 = inlined_call_operand.vmem [shape: f32[32,32], index: 1, kind: input, shape index: {}]   ;;  %s2206_s2 = inlined_call_operand.vmem [shape: f32[2,32], index: 2, kind: input, shape index: {}]   ;;  %s2207_s3 = inlined_call_operand.vmem [shape: f32[32,2], index: 3, kind: input, shape index: {}]   ;;  %s2208_s4 = inlined_call_operand.vmem [shape: f32[1,32], index: 4, kind: input, shape index: {}]   ;;  %s2209_s5 = inlined_call_operand.vmem [shape: bf16[8,64,64], index: 5, kind: input, shape index: {}]   ;;  %s2210_s6 = inlined_call_operand.vmem [shape: f32[8,64,32], index: 6, kind: output, shape index: {}]  }
   0x1 LB: > { %s1387_s22 = sadd.s32 4294967295, %s1755_s21   ;;  %p1391_p0 = scmp.ge.s32.totalorder %s1755_s21, 1  ;;  %s1755_s21 = sphi %s1798_s21, %s16_s21  }
   0x2   : > { %p222_p1 = scmp.lt.s32.totalorder %s1755_s21, 9 }
   0x4   : > { %p223_p2 = pnand %p1391_p0, %p222_p1 }
   0x5   : > { %p257_p3 = scmp.lt.s32.totalorder (!%p223_p2), %s1387_s22, 7  ;;  %s1761_s23 = smov (!%p223_p2), 112  }
   0x6   : > { %226 = sbr.rel (%p223_p2) target bundleno = 1055 (0x41f), region = 44  ;;  %s1762_s28 = smov (!%p223_p2), 16  }
   0xb   : > { %v283_v0 = vld [vmem:[%s2205_s1 + $0x18] sm:$0xff]  ;;  %v282_v1 = vld [vmem:[%s2205_s1 + $0x10] sm:$0xff]  ;;  %v281_v2 = vld [vmem:[%s2205_s1 + $0x8] sm:$0xff]  ;;  %s2212_s22 = smov (!%p257_p3, %s1387_s22), 7  ;;  %vm284_vm0 = vcmask 261120   ;;  %v1757_v16 = vmov 0.0   ;;  %v677_v38 = vlaneseq }
   0xc   : > { %1529 = vmatprep.subr.mxu0 %v283_v0  ;;  %v280_v3 = vld [vmem:[%s2205_s1] sm:$0xff]  ;;  %s1442_s7 = sshll.u32 %s2212_s22, 6  ;;  %v515_v6 = vld [vmem:[%s2207_s3 + $0x18] sm:$0xff]  ;;  %v514_v8 = vld [vmem:[%s2207_s3 + $0x10] sm:$0xff]  ;;  %1549 = vmatprep.subr.mxu1 %v1757_v16  ;;  %vm1758_vm1 = vmmov 0   ;;  %v1759_v17 = vmov 1  }
   0xd   : > { %1530 = vmatpush3.msra.mxu0 %v283_v0  ;;  %s261_s10 = scalar_lea.vmem %s2204_s0, %s1442_s7  ;;  %v513_v10 = vld [vmem:[%s2207_s3 + $0x8] sm:$0xff]  ;;  %v512_v12 = vld [vmem:[%s2207_s3] sm:$0xff]  ;;  %1565 = vmatprep.mubr.msk.f32.mxu1 %vm1758_vm1, %v1757_v16  ;;  %v1760_v18 = vmov 0   ;;  %v678_v39 = vshrl.u32 %v677_v38, 7  ;;  %s1443_s24 = sshll.u32 %s2212_s22, 5  ;;  %vm713_vm2 = vcmask 523264  }
   0xe   : > { %1531 = vmatprep.subr.mxu0 %v282_v1  ;;  %v272_v4 = vld [vmem:[%s261_s10] sm:$0xff]  ;;  %v273_v5 = vld [vmem:[%s261_s10 + $0x8] sm:$0xff]  ;;  %v274_v7 = vld [vmem:[%s261_s10 + $0x10] sm:$0xff]  ;;  %1675 = vset.pattern.permute.xlu1 %v1759_v17  ;;  %s1945_s27 = scalar_lea.vmem %s2209_s5, %s1443_s24  ;;  %vm1288_vm3 = vcmask 130048  }
   0xf   : > { %1532 = vmatpush3.msra.mxu0 %v282_v1  ;;  %1537 = vmatprep.mubr.msk.f32.mxu0 %vm284_vm0, %v272_v4  ;;  %v275_v9 = vld [vmem:[%s261_s10 + $0x18] sm:$0xff]  ;;  %v276_v11 = vld [vmem:[%s261_s10 + $0x20] sm:$0xff]  ;;  %v277_v13 = vld [vmem:[%s261_s10 + $0x28] sm:$0xff]  ;;  %v679_v40 = vsub.s32 0, %v678_v39  ;;  %v973_v41 = vsub.s32 1, %v678_v39 }
  0x10   : > { %1533 = vmatprep.subr.mxu0 %v281_v2  ;;  %v278_v14 = vld [vmem:[%s261_s10 + $0x30] sm:$0xff]  ;;  %v279_v15 = vld [vmem:[%s261_s10 + $0x38] sm:$0xff]  ;;  %1674 = vset.pattern.permute.xlu0 %v1760_v18  ;;  %v414_v27 = vld [vmem:[%s2206_s2] sm:$0x3]  ;;  %s2168_s10 = scalar_lea.vmem %s2210_s6, %s1442_s7 }
  0x11   : > { %1534 = vmatpush3.msra.mxu0 %v281_v2  ;;  %v1446_v46 = vld [vmem:[%s1945_s27] sm:$0xff]   ;;  %v1953_v58 = vld [vmem:[%s1945_s27 + $0x8] sm:$0xff]  }
  0x12   : > { %1535 = vmatprep.subr.mxu0 %v280_v3  ;;  %v1448_v51 = vunpack.c.h.bf16 %v1446_v46  ;;  %v1447_v61 = vunpack.c.l.bf16 %v1446_v46 }
  0x13   : > { %1536 = vmatpush3.msra.mxu0 %v280_v3  ;;  %v1452_v3 = vunpack.c.h.bf16 %v1953_v58 }
  0x14   : > { %1538 = vmatmul.mubr.msk.f32.vlgmr.msra.gmra.mxu0 %vm284_vm0, %v273_v5  ;;  %1568 = vmatprep.subr.mxu0 %v515_v6 }
  0x15   : > { %1540 = vmatprep.mubr.msk.f32.mxu0 %vm284_vm0, %v274_v7  ;;  %1569 = vmatpush3.msra.mxu0 %v515_v6 }
  0x16   : > { %1570 = vmatprep.subr.mxu0 %v514_v8 }
  0x17   : > { %1571 = vmatpush3.msra.mxu0 %v514_v8 }
  0x18   : > { %1541 = vmatmul.mubr.msk.f32.gmra.mxu0 %vm284_vm0, %v275_v9  ;;  %1572 = vmatprep.subr.mxu0 %v513_v10 }
  0x19   : > { %1543 = vmatprep.mubr.msk.f32.mxu0 %vm284_vm0, %v276_v11  ;;  %1573 = vmatpush3.msra.mxu0 %v513_v10 }
  0x1a   : > { %1574 = vmatprep.subr.mxu0 %v512_v12 }
  0x1b   : > { %1575 = vmatpush3.msra.mxu0 %v512_v12 }
  0x1c   : > { %1544 = vmatmul.mubr.msk.f32.gmra.mxu0 %vm284_vm0, %v277_v13 }
  0x1d   : > { %1546 = vmatprep.mubr.msk.f32.mxu0 %vm284_vm0, %v278_v14 }
  0x20   : > { %1547 = vmatmul.mubr.msk.f32.gmra.mxu0 %vm284_vm0, %v279_v15 }
  0xd4   : > { %v1848_v19 = vpop.f32.mrf.mxu0 }
  0xd6   : > { %v1850_v20 = vpop.f32.mrf.mxu0 }
  0xd7   : > { %1576 = vmatprep.mubr.msk.f32.mxu0 %vm284_vm0, %v1850_v20 }
  0xd8   : > { %v1854_v21 = vpop.f32.mrf.mxu0  ;;  %1577 = vmatmul.mubr.msk.f32.vlgmr.msra.gmra.mxu0 %vm284_vm0, %v1848_v19 }
  0xda   : > { %v1858_v22 = vpop.f32.mrf.mxu0 }
  0xdb   : > { %1579 = vmatprep.mubr.msk.f32.mxu0 %vm284_vm0, %v1858_v22 }
  0xdc   : > { %v1862_v23 = vpop.f32.mrf.mxu0  ;;  %1580 = vmatmul.mubr.msk.f32.gmra.mxu0 %vm284_vm0, %v1854_v21 }
  0xde   : > { %v1866_v24 = vpop.f32.mrf.mxu0 }
  0xdf   : > { %1582 = vmatprep.mubr.msk.f32.mxu0 %vm284_vm0, %v1866_v24 }
  0xe0   : > { %v1870_v25 = vpop.f32.mrf.mxu0  ;;  %1583 = vmatmul.mubr.msk.f32.gmra.mxu0 %vm284_vm0, %v1862_v23 }
  0xe1   : > { %1550 = vmatpush3.xpose.msk.msra.mxu1 %vm284_vm0, %v1870_v25  ;;  %1588 = vmatprep.subr.mxu0 %v1870_v25 }
  0xe2   : > { %v1877_v26 = vpop.f32.mrf.mxu0  ;;  %1589 = vmatpush3.msra.mxu0 %v1870_v25  ;;  %1551 = vmatprep.subr.mxu1 %v1757_v16 }
  0xe3   : > { %1590 = vmatprep.subr.mxu0 %v1877_v26  ;;  %1585 = vmatprep.mubr.msk.f32.mxu0 %vm284_vm0, %v1877_v26 }
  0xe4   : > { %1591 = vmatpush3.msra.mxu0 %v1877_v26 }
  0xe5   : > { %1552 = vmatpush3.xpose.msk.msra.mxu1 %vm284_vm0, %v1877_v26  ;;  %1592 = vmatprep.subr.mxu0 %v1862_v23 }
  0xe6   : > { %1593 = vmatpush3.msra.mxu0 %v1862_v23  ;;  %1553 = vmatprep.subr.mxu1 %v1757_v16 }
  0xe7   : > { %1594 = vmatprep.subr.mxu0 %v1866_v24  ;;  %1586 = vmatmul.mubr.msk.f32.gmra.mxu0 %vm284_vm0, %v1870_v25 }
  0xe8   : > { %1595 = vmatpush3.msra.mxu0 %v1866_v24 }
  0xe9   : > { %1554 = vmatpush3.xpose.msk.msra.mxu1 %vm284_vm0, %v1862_v23  ;;  %1596 = vmatprep.subr.mxu0 %v1854_v21 }
  0xea   : > { %1597 = vmatpush3.msra.mxu0 %v1854_v21  ;;  %1555 = vmatprep.subr.mxu1 %v1757_v16 }
  0xeb   : > { %1598 = vmatprep.subr.mxu0 %v1858_v22 }
  0xec   : > { %1599 = vmatpush3.msra.mxu0 %v1858_v22 }
  0xed   : > { %1556 = vmatpush3.xpose.msk.msra.mxu1 %vm284_vm0, %v1866_v24  ;;  %1600 = vmatprep.subr.mxu0 %v1848_v19 }
  0xee   : > { %1601 = vmatpush3.msra.mxu0 %v1848_v19  ;;  %1557 = vmatprep.subr.mxu1 %v1757_v16 }
  0xef   : > { %1602 = vmatprep.subr.mxu0 %v1850_v20 }
  0xf0   : > { %1603 = vmatpush3.msra.mxu0 %v1850_v20 }
  0xf1   : > { %1558 = vmatpush3.xpose.msk.msra.mxu1 %vm284_vm0, %v1854_v21 }
  0xf2   : > { %1559 = vmatprep.subr.mxu1 %v1757_v16 }
  0xf5   : > { %1560 = vmatpush3.xpose.msk.msra.mxu1 %vm284_vm0, %v1858_v22 }
  0xf6   : > { %1561 = vmatprep.subr.mxu1 %v1757_v16 }
  0xf9   : > { %1562 = vmatpush3.xpose.msk.msra.mxu1 %vm284_vm0, %v1848_v19 }
  0xfa   : > { %1563 = vmatprep.subr.mxu1 %v1757_v16 }
  0xfd   : > { %1564 = vmatpush3.xpose.msk.msra.mxu1 %vm284_vm0, %v1850_v20 }
 0x100   : > { %1566 = vmatmul.mubr.msk.f32.vlgmr.msra.gmra.mxu1 %vm284_vm0, %v414_v27 }
 0x198   : > { %v1578_v28 = vpop.f32.mrf.mxu0 }
 0x199   : > { %944 = vperm.xlu1 %1675, %v1578_v28   ;;  %644 = vperm.xlu0 %1674, %v1578_v28  }
 0x19a   : > { %v582_v29 = vpop.f32.mrf.mxu0 }
 0x19c   : > { %v1581_v30 = vpop.f32.mrf.mxu0 }
 0x19d   : > { %1677 = vset.pattern.permute.xlu1 %v1760_v18  ;;  %639 = vperm.xlu0 %1674, %v582_v29  }
 0x19e   : > { %654 = vperm.xlu1 %1677, %v1581_v30   ;;  %v592_v31 = vpop.f32.mrf.mxu0 }
 0x1a0   : > { %v1584_v32 = vpop.f32.mrf.mxu0 }
 0x1a1   : > { %1676 = vset.pattern.permute.xlu0 %v1759_v17 }
 0x1a2   : > { %940 = vperm.xlu0 %1676, %v582_v29   ;;  %1678 = vset.pattern.permute.xlu1 %v1759_v17  ;;  %v602_v33 = vpop.f32.mrf.mxu0 }
 0x1a3   : > { %952 = vperm.xlu1 %1678, %v1581_v30   ;;  %v1451_v30 = vunpack.c.l.bf16 %v1953_v58 }
 0x1a6   : > { %1681 = vset.pattern.permute.xlu0 %v1760_v18 }
 0x1a7   : > { %1679 = vset.pattern.permute.xlu1 %v1760_v18  ;;  %664 = vperm.xlu0 %1681, %v1584_v32   ;;  %v1587_v34 = vpop.f32.mrf.mxu0 }
 0x1a8   : > { %649 = vperm.xlu1 %1679, %v592_v31  }
 0x1a9   : > { %v612_v35 = vpop.f32.mrf.mxu0 }
 0x1ab   : > { %659 = vperm.xlu0 %1681, %v602_v33  }
 0x1ac   : > { %1680 = vset.pattern.permute.xlu1 %v1759_v17 }
 0x1ad   : > { %948 = vperm.xlu1 %1680, %v592_v31  }
 0x1af   : > { %674 = vperm.xlu0 %1681, %v1587_v34  }
 0x1b1   : > { %960 = vperm.xlu1 %1680, %v1584_v32  }
 0x1b3   : > { %1682 = vset.pattern.permute.xlu0 %v1759_v17 }
 0x1b4   : > { %968 = vperm.xlu0 %1682, %v1587_v34  }
 0x1b5   : > { %956 = vperm.xlu1 %1680, %v602_v33  }
 0x1b8   : > { %1683 = vset.pattern.permute.xlu0 %v1760_v18 }
 0x1b9   : > { %964 = vperm.xlu1 %1680, %v612_v35   ;;  %669 = vperm.xlu0 %1683, %v612_v35  }
 0x1bd   : > { %1091 = vrot.lane.b32.xlu1 %v1877_v26, %s1761_s23  ;;  %1093 = vrot.lane.b32.xlu0 %v1870_v25, %s1761_s23  ;;  %v1462_v26 = vld [vmem:[%s1945_s27 + $0x10] sm:$0xff]  }
 0x1be   : > { %1684 = vset.pattern.permute.xlu0 %v1759_v17  ;;  %v1456_v35 = vunpack.c.h.bf16 %v1462_v26 }
 0x1c0   : > { %v508_v36 = vpop.f32.mrf.mxu1 }
 0x1c1   : > { %1089 = vrot.lane.b32.xlu1 %v1862_v23, %s1761_s23  ;;  %1087 = vrot.lane.b32.xlu0 %v1866_v24, %s1761_s23  ;;  %v1938_v42 = vrot.slane %v508_v36, %v679_v40  ;;  %v1940_v43 = vrot.slane %v508_v36, %v973_v41 }
 0x1c2   : > { %v1567_v37 = vpop.f32.mrf.mxu1 }
 0x1c5   : > { %1085 = vrot.lane.b32.xlu1 %v1854_v21, %s1761_s23  ;;  %1083 = vrot.lane.b32.xlu0 %v1858_v22, %s1761_s23 }
 0x214   : > { %v945_v44 = vpop.permute.xlu1 %944  ;;  %v645_v45 = vpop.permute.xlu0 %644 }
 0x215   : > { %v976_v47 = vadd.f32 %v1940_v43, %v945_v44  ;;  %v682_v48 = vadd.f32 %v1938_v42, %v645_v45 }
 0x217   : > { %v984_v49 = vmul.f32 0.2, %v976_v47  ;;  %v690_v50 = vmul.f32 0.2, %v682_v48 }
 0x218   : > { %v640_v52 = vpop.permute.xlu0 %639 }
 0x219   : > { %v992_v53 = vmax.f32 %v976_v47, %v984_v49  ;;  %v698_v54 = vmax.f32 %v682_v48, %v690_v50  ;;  %v681_v55 = vadd.f32 %v1938_v42, %v640_v52  ;;  %v655_v56 = vpop.permute.xlu1 %654  ;;  %v1455_v49 = vunpack.c.l.bf16 %v1462_v26  ;;  %v1463_v50 = vld [vmem:[%s1945_s27 + $0x18] sm:$0xff]  }
 0x21a   : > { %v684_v57 = vadd.f32 %v1938_v42, %v655_v56 }
 0x21b   : > { %v689_v59 = vmul.f32 0.2, %v681_v55  ;;  %v1955_v60 = vadd.f32 %v1448_v51, %v698_v54  ;;  %v1959_v2 = vadd.f32 %v1448_v51, %v992_v53 }
 0x21c   : > { %v692_v62 = vmul.f32 0.2, %v684_v57 }
 0x21d   : > { %v697_v63 = vmax.f32 %v681_v55, %v689_v59  ;;  %v941_v0 = vpop.permute.xlu0 %940  ;;  %v717_v1 = vsel %vm713_vm2, %v1955_v60, -inf  ;;  %v1010_v11 = vsel %vm713_vm2, %v1959_v2, -inf }
 0x21e   : > { %v700_v4 = vmax.f32 %v684_v57, %v692_v62  ;;  %v975_v5 = vadd.f32 %v1940_v43, %v941_v0  ;;  %v953_v6 = vpop.permute.xlu1 %952  ;;  %718 = vmax.xlane.f32.xlu0 %v717_v1  ;;  %v1460_v57 = vunpack.c.h.bf16 %v1463_v50 }
 0x21f   : > { %v978_v7 = vadd.f32 %v1940_v43, %v953_v6  ;;  %v1964_v8 = vadd.f32 %v1447_v61, %v697_v63 }
 0x220   : > { %v983_v9 = vmul.f32 0.2, %v975_v5  ;;  %v1970_v13 = vadd.f32 %v1452_v3, %v700_v4 }
 0x221   : > { %v986_v10 = vmul.f32 0.2, %v978_v7  ;;  %v714_v12 = vsel %vm713_vm2, %v1964_v8, -inf }
 0x222   : > { %v991_v14 = vmax.f32 %v975_v5, %v983_v9  ;;  %v665_v15 = vpop.permute.xlu0 %664  ;;  %1011 = vmax.xlane.f32.xlu0 %v1010_v11  ;;  %715 = vmax.xlane.f32.xlu1 %v714_v12  ;;  %v723_v24 = vsel %vm713_vm2, %v1970_v13, -inf }
 0x223   : > { %v994_v16 = vmax.f32 %v978_v7, %v986_v10  ;;  %v686_v17 = vadd.f32 %v1938_v42, %v665_v15  ;;  %v650_v18 = vpop.permute.xlu1 %649 }
 0x224   : > { %v683_v21 = vadd.f32 %v1938_v42, %v650_v18  ;;  %v1974_v22 = vadd.f32 %v1447_v61, %v991_v14 }
 0x225   : > { %v694_v23 = vmul.f32 0.2, %v686_v17  ;;  %v1978_v25 = vadd.f32 %v1452_v3, %v994_v16 }
 0x226   : > { %v691_v27 = vmul.f32 0.2, %v683_v21  ;;  %v660_v28 = vpop.permute.xlu0 %659  ;;  %724 = vmax.xlane.f32.xlu1 %v723_v24  ;;  %v1007_v29 = vsel %vm713_vm2, %v1974_v22, -inf  ;;  %v1459_v24 = vunpack.c.l.bf16 %v1463_v50 }
 0x227   : > { %v685_v31 = vadd.f32 %v1938_v42, %v660_v28  ;;  %1008 = vmax.xlane.f32.xlu0 %v1007_v29  ;;  %v702_v32 = vmax.f32 %v686_v17, %v694_v23  ;;  %v1016_v38 = vsel %vm713_vm2, %v1978_v25, -inf }
 0x228   : > { %v699_v33 = vmax.f32 %v683_v21, %v691_v27  ;;  %v949_v34 = vpop.permute.xlu1 %948 }
 0x229   : > { %v693_v36 = vmul.f32 0.2, %v685_v31  ;;  %v977_v37 = vadd.f32 %v1940_v43, %v949_v34  ;;  %v1993_v48 = vadd.f32 %v1456_v35, %v702_v32 }
 0x22a   : > { %v675_v39 = vpop.permute.xlu0 %674  ;;  %1017 = vmax.xlane.f32.xlu1 %v1016_v38  ;;  %v1988_v40 = vadd.f32 %v1451_v30, %v699_v33 }
 0x22b   : > { %v985_v41 = vmul.f32 0.2, %v977_v37  ;;  %v688_v44 = vadd.f32 %v1938_v42, %v675_v39  ;;  %v701_v45 = vmax.f32 %v685_v31, %v693_v36  ;;  %v729_v62 = vsel %vm713_vm2, %v1993_v48, -inf }
 0x22c   : > { %v961_v46 = vpop.permute.xlu1 %960  ;;  %v720_v47 = vsel %vm713_vm2, %v1988_v40, -inf }
 0x22d   : > { %v993_v51 = vmax.f32 %v977_v37, %v985_v41  ;;  %v696_v52 = vmul.f32 0.2, %v688_v44  ;;  %v980_v53 = vadd.f32 %v1940_v43, %v961_v46  ;;  %721 = vmax.xlane.f32.xlu0 %v720_v47  ;;  %v2002_v63 = vadd.f32 %v1455_v49, %v701_v45 }
 0x22f   : > { %v988_v54 = vmul.f32 0.2, %v980_v53  ;;  %v969_v55 = vpop.permute.xlu0 %968  ;;  %v1997_v56 = vadd.f32 %v1451_v30, %v993_v51  ;;  %v704_v58 = vmax.f32 %v688_v44, %v696_v52  ;;  %v726_v10 = vsel %vm713_vm2, %v2002_v63, -inf }
 0x230   : > { %v982_v59 = vadd.f32 %v1940_v43, %v969_v55  ;;  %v957_v61 = vpop.permute.xlu1 %956 }
 0x231   : > { %v996_v0 = vmax.f32 %v980_v53, %v988_v54  ;;  %v979_v1 = vadd.f32 %v1940_v43, %v957_v61  ;;  %730 = vmax.xlane.f32.xlu0 %v729_v62  ;;  %v1013_v3 = vsel %vm713_vm2, %v1997_v56, -inf  ;;  %v2011_v11 = vadd.f32 %v1460_v57, %v704_v58 }
 0x232   : > { %v990_v4 = vmul.f32 0.2, %v982_v59  ;;  %1014 = vmax.xlane.f32.xlu1 %v1013_v3 }
 0x233   : > { %v987_v5 = vmul.f32 0.2, %v979_v1  ;;  %v2007_v6 = vadd.f32 %v1456_v35, %v996_v0 }
 0x234   : > { %v965_v7 = vpop.permute.xlu1 %964  ;;  %v670_v9 = vpop.permute.xlu0 %669  ;;  %v998_v17 = vmax.f32 %v982_v59, %v990_v4 }
 0x235   : > { %v995_v12 = vmax.f32 %v979_v1, %v987_v5  ;;  %v981_v14 = vadd.f32 %v1940_v43, %v965_v7  ;;  %v687_v15 = vadd.f32 %v1938_v42, %v670_v9  ;;  %727 = vmax.xlane.f32.xlu0 %v726_v10  ;;  %v1022_v16 = vsel %vm713_vm2, %v2007_v6, -inf }
 0x236   : > { %1023 = vmax.xlane.f32.xlu1 %v1022_v16  ;;  %v735_v42 = vsel %vm713_vm2, %v2011_v11, -inf  ;;  %v2030_v30 = vadd.f32 %v1460_v57, %v998_v17 }
 0x237   : > { %v989_v18 = vmul.f32 0.2, %v981_v14  ;;  %v695_v21 = vmul.f32 0.2, %v687_v15  ;;  %v2017_v23 = vadd.f32 %v1455_v49, %v995_v12 }
 0x238   : > { %v2019_v26 = vpop.permute.xlu1 %1091  ;;  %v2021_v27 = vpop.permute.xlu0 %1093  ;;  %v1028_v35 = vsel %vm713_vm2, %v2030_v30, -inf }
 0x239   : > { %v703_v28 = vmax.f32 %v687_v15, %v695_v21  ;;  %1616 = vmatprep.subr.mxu0 %v2021_v27  ;;  %1644 = vmatprep.subr.mxu1 %v2021_v27  ;;  %v1019_v43 = vsel %vm713_vm2, %v2017_v23, -inf  ;;  %v997_v29 = vmax.f32 %v981_v14, %v989_v18 }
 0x23a   : > { %736 = vmax.xlane.f32.xlu0 %v735_v42  ;;  %1652 = vmatpush3.msra.mxu1 %v2021_v27 }
 0x23b   : > { %1020 = vmax.xlane.f32.xlu1 %v1019_v43  ;;  %1645 = vmatprep.subr.mxu1 %v2019_v26  ;;  %v2033_v31 = vadd.f32 %v1459_v24, %v703_v28  ;;  %v2046_v36 = vadd.f32 %v1459_v24, %v997_v29 }
 0x23c   : > { %v2035_v32 = vpop.permute.xlu1 %1089  ;;  %v2037_v33 = vpop.permute.xlu0 %1087  ;;  %1653 = vmatpush3.msra.mxu1 %v2019_v26 }
 0x23d   : > { %1646 = vmatprep.subr.mxu1 %v2035_v32  ;;  %v732_v34 = vsel %vm713_vm2, %v2033_v31, -inf  ;;  %v1025_v39 = vsel %vm713_vm2, %v2046_v36, -inf }
 0x23e   : > { %1654 = vmatpush3.msra.mxu1 %v2035_v32  ;;  %733 = vmax.xlane.f32.xlu0 %v732_v34 }
 0x23f   : > { %1029 = vmax.xlane.f32.xlu1 %v1028_v35  ;;  %1647 = vmatprep.subr.mxu1 %v2037_v33 }
 0x240   : > { %v2049_v37 = vpop.permute.xlu1 %1085  ;;  %1655 = vmatpush3.msra.mxu1 %v2037_v33  ;;  %v2053_v38 = vpop.permute.xlu0 %1083 }
 0x241   : > { %1648 = vmatprep.subr.mxu1 %v2049_v37 }
 0x242   : > { %1656 = vmatpush3.msra.mxu1 %v2049_v37 }
 0x243   : > { %1026 = vmax.xlane.f32.xlu1 %v1025_v39  ;;  %1649 = vmatprep.subr.mxu1 %v2053_v38 }
 0x244   : > { %1657 = vmatpush3.msra.mxu1 %v2053_v38 }
 0x254   : > { %1081 = vrot.lane.b32.xlu1 %v1848_v19, %s1761_s23  ;;  %1079 = vrot.lane.b32.xlu0 %v1850_v20, %s1761_s23 }
 0x2a7   : > { %v719_v41 = vpop.xlane.xlu0 %718 }
 0x2a8   : > { %v739_v44 = vsub.f32 %v1955_v60, %v719_v41 }
 0x2aa   : > { %v748_v50 = vmul.f32 1.442695, %v739_v44 }
 0x2ab   : > { %v1012_v45 = vpop.xlane.xlu0 %1011  ;;  %v716_v46 = vpop.xlane.xlu1 %715 }
 0x2ac   : > { %v1032_v47 = vsub.f32 %v1959_v2, %v1012_v45  ;;  %v738_v49 = vsub.f32 %v1964_v8, %v716_v46 }
 0x2ae   : > { %v1041_v51 = vmul.f32 1.442695, %v1032_v47  ;;  %v746_v52 = vmul.f32 1.442695, %v738_v49 }
 0x2af   : > { %v725_v53 = vpop.xlane.xlu1 %724 }
 0x2b0   : > { %1685 = vpow2.f32 %v1041_v51  ;;  %v1009_v54 = vpop.xlane.xlu0 %1008  ;;  %v741_v60 = vsub.f32 %v1970_v13, %v725_v53 }
 0x2b1   : > { %1687 = vpow2.f32 %v746_v52  ;;  %v1031_v19 = vsub.f32 %v1974_v22, %v1009_v54 }
 0x2b2   : > { %1689 = vpow2.f32 %v748_v50  ;;  %v752_v59 = vmul.f32 1.442695, %v741_v60 }
 0x2b3   : > { %v1039_v20 = vmul.f32 1.442695, %v1031_v19  ;;  %v1018_v55 = vpop.xlane.xlu1 %1017 }
 0x2b4   : > { %v1034_v57 = vsub.f32 %v1978_v25, %v1018_v55 }
 0x2b5   : > { %1691 = vpow2.f32 %v1039_v20 }
 0x2b6   : > { %v1045_v2 = vmul.f32 1.442695, %v1034_v57  ;;  %v722_v58 = vpop.xlane.xlu0 %721 }
 0x2b7   : > { %v740_v8 = vsub.f32 %v1988_v40, %v722_v58 }
 0x2b8   : > { %1693 = vpow2.f32 %v1045_v2 }
 0x2b9   : > { %v750_v61 = vmul.f32 1.442695, %v740_v8 }
 0x2ba   : > { %v731_v62 = vpop.xlane.xlu0 %730 }
 0x2bb   : > { %1695 = vpow2.f32 %v750_v61  ;;  %v1015_v0 = vpop.xlane.xlu1 %1014  ;;  %v743_v13 = vsub.f32 %v1993_v48, %v731_v62 }
 0x2bc   : > { %1697 = vpow2.f32 %v752_v59  ;;  %v1033_v22 = vsub.f32 %v1997_v56, %v1015_v0 }
 0x2bd   : > { %v2072_v1 = vpop.eup %1685  ;;  %v756_v9 = vmul.f32 1.442695, %v743_v13 }
 0x2be   : > { %v2075_v3 = vpop.eup %1687  ;;  %v1043_v25 = vmul.f32 1.442695, %v1033_v22  ;;  %v728_v4 = vpop.xlane.xlu0 %727  ;;  %v1058_v40 = vsel %vm713_vm2, %v2072_v1, 0.0 }
 0x2bf   : > { %v2079_v5 = vpop.eup %1689  ;;  %v742_v7 = vsub.f32 %v2002_v63, %v728_v4  ;;  %1604 = vmatprep.mubr.msk.f32.mxu0 %vm713_vm2, %v2075_v3  ;;  %1059 = vadd.xlane.f32.xlu0 %v1058_v40  ;;  %v1024_v56 = vpop.xlane.xlu1 %1023  ;;  %v762_v20 = vsel %vm713_vm2, %v2075_v3, 0.0 }
 0x2c0   : > { %1699 = vpow2.f32 %v1043_v25  ;;  %1605 = vmatmul.mubr.msk.f32.vlgmr.msra.gmra.mxu0 %vm713_vm2, %v2079_v5  ;;  %v1036_v48 = vsub.f32 %v2007_v6, %v1024_v56  ;;  %v765_v53 = vsel %vm713_vm2, %v2079_v5, 0.0 }
 0x2c1   : > { %v754_v10 = vmul.f32 1.442695, %v742_v7  ;;  %1617 = vmatpush3.msra.mxu0 %v2021_v27 }
 0x2c2   : > { %v2088_v12 = vpop.eup %1691  ;;  %v1049_v14 = vmul.f32 1.442695, %v1036_v48  ;;  %1618 = vmatprep.subr.mxu0 %v2019_v26 }
 0x2c3   : > { %1701 = vpow2.f32 %v754_v10  ;;  %1619 = vmatpush3.msra.mxu0 %v2019_v26  ;;  %v737_v63 = vpop.xlane.xlu0 %736  ;;  %v1055_v15 = vsel %vm713_vm2, %v2088_v12, 0.0 }
 0x2c4   : > { %1703 = vpow2.f32 %v1049_v14  ;;  %v745_v16 = vsub.f32 %v2011_v11, %v737_v63  ;;  %1620 = vmatprep.subr.mxu0 %v2035_v32  ;;  %v1021_v6 = vpop.xlane.xlu1 %1020  ;;  %1056 = vadd.xlane.f32.xlu1 %v1055_v15 }
 0x2c5   : > { %v1694_v17 = vpop.eup %1693  ;;  %1705 = vpow2.f32 %v756_v9  ;;  %1621 = vmatpush3.msra.mxu0 %v2035_v32  ;;  %v1035_v18 = vsub.f32 %v2017_v23, %v1021_v6 }
 0x2c6   : > { %1622 = vmatprep.subr.mxu0 %v2037_v33  ;;  %v1064_v21 = vsel %vm713_vm2, %v1694_v17, 0.0  ;;  %v760_v24 = vmul.f32 1.442695, %v745_v16 }
 0x2c7   : > { %v1047_v26 = vmul.f32 1.442695, %v1035_v18  ;;  %1623 = vmatpush3.msra.mxu0 %v2037_v33  ;;  %v734_v27 = vpop.xlane.xlu0 %733 }
 0x2c8   : > { %v2101_v11 = vpop.eup %1695  ;;  %1624 = vmatprep.subr.mxu0 %v2049_v37  ;;  %v744_v28 = vsub.f32 %v2033_v31, %v734_v27  ;;  %v1030_v42 = vpop.xlane.xlu1 %1029  ;;  %1065 = vadd.xlane.f32.xlu1 %v1064_v21 }
 0x2c9   : > { %v1698_v43 = vpop.eup %1697  ;;  %1707 = vpow2.f32 %v1047_v26  ;;  %1625 = vmatpush3.msra.mxu0 %v2049_v37  ;;  %v1038_v23 = vsub.f32 %v2030_v30, %v1030_v42  ;;  %1607 = vmatprep.mubr.msk.f32.mxu0 %vm713_vm2, %v2101_v11  ;;  %v768_v60 = vsel %vm713_vm2, %v2101_v11, 0.0 }
 0x2ca   : > { %v758_v29 = vmul.f32 1.442695, %v744_v28  ;;  %1626 = vmatprep.subr.mxu0 %v2053_v38  ;;  %1608 = vmatmul.mubr.msk.f32.gmra.mxu0 %vm713_vm2, %v1698_v43  ;;  %1709 = vpow2.f32 %v760_v24  ;;  %v771_v19 = vsel %vm713_vm2, %v1698_v43, 0.0 }
 0x2cb   : > { %v1053_v32 = vmul.f32 1.442695, %v1038_v23  ;;  %1627 = vmatpush3.msra.mxu0 %v2053_v38  ;;  %v1080_v45 = vpop.permute.xlu0 %1079 }
 0x2cc   : > { %1711 = vpow2.f32 %v758_v29  ;;  %v1027_v31 = vpop.xlane.xlu1 %1026 }
 0x2cd   : > { %v1700_v33 = vpop.eup %1699  ;;  %1713 = vpow2.f32 %v1053_v32  ;;  %v1037_v34 = vsub.f32 %v2046_v36, %v1027_v31 }
 0x2ce   : > { %1635 = vmatprep.mubr.msk.f32.mxu1 %vm713_vm2, %v1700_v33  ;;  %v1061_v30 = vsel %vm713_vm2, %v1700_v33, 0.0 }
 0x2cf   : > { %v1051_v35 = vmul.f32 1.442695, %v1037_v34  ;;  %1062 = vadd.xlane.f32.xlu0 %v1061_v30 }
 0x2d0   : > { %v1702_v37 = vpop.eup %1701  ;;  %v1082_v39 = vpop.permute.xlu1 %1081 }
 0x2d1   : > { %v1704_v41 = vpop.eup %1703  ;;  %1715 = vpow2.f32 %v1051_v35  ;;  %1628 = vmatprep.subr.mxu0 %v1082_v39  ;;  %1650 = vmatprep.subr.mxu1 %v1082_v39  ;;  %v774_v2 = vsel %vm713_vm2, %v1702_v37, 0.0 }
 0x2d2   : > { %v1706_v44 = vpop.eup %1705  ;;  %1610 = vmatprep.mubr.msk.f32.mxu0 %vm713_vm2, %v1702_v37  ;;  %1629 = vmatpush3.msra.mxu0 %v1082_v39  ;;  %v1070_v38 = vsel %vm713_vm2, %v1704_v41, 0.0 }
 0x2d3   : > { %1658 = vmatpush3.msra.mxu1 %v1082_v39  ;;  %1611 = vmatmul.mubr.msk.f32.gmra.mxu0 %vm713_vm2, %v1706_v44  ;;  %v777_v55 = vsel %vm713_vm2, %v1706_v44, 0.0 }
 0x2d4   : > { %1630 = vmatprep.subr.mxu0 %v1080_v45  ;;  %1651 = vmatprep.subr.mxu1 %v1080_v45 }
 0x2d5   : > { %1071 = vadd.xlane.f32.xlu1 %v1070_v38  ;;  %1631 = vmatpush3.msra.mxu0 %v1080_v45 }
 0x2d6   : > { %v1708_v36 = vpop.eup %1707  ;;  %1659 = vmatpush3.msra.mxu1 %v1080_v45 }
 0x2d7   : > { %1636 = vmatmul.mubr.msk.f32.vlgmr.msra.gmra.mxu1 %vm713_vm2, %v1694_v17  ;;  %v1067_v46 = vsel %vm713_vm2, %v1708_v36, 0.0  ;;  %v1710_v47 = vpop.eup %1709 }
 0x2d8   : > { %1638 = vmatprep.mubr.msk.f32.mxu1 %vm713_vm2, %v1708_v36  ;;  %1068 = vadd.xlane.f32.xlu0 %v1067_v46  ;;  %v783_v57 = vsel %vm713_vm2, %v1710_v47, 0.0 }
 0x2d9   : > { %v1712_v49 = vpop.eup %1711 }
 0x2da   : > { %v1714_v50 = vpop.eup %1713  ;;  %1613 = vmatprep.mubr.msk.f32.mxu0 %vm713_vm2, %v1712_v49  ;;  %v780_v58 = vsel %vm713_vm2, %v1712_v49, 0.0 }
 0x2db   : > { %1639 = vmatmul.mubr.msk.f32.gmra.mxu1 %vm713_vm2, %v1704_v41  ;;  %1614 = vmatmul.mubr.msk.f32.gmra.mxu0 %vm713_vm2, %v1710_v47  ;;  %v1076_v51 = vsel %vm713_vm2, %v1714_v50, 0.0  ;;  %v1439_v47 = vld [vmem:[%s2208_s4] ss:$0 sm:$0xff] }
 0x2dc   : > { %1077 = vadd.xlane.f32.xlu1 %v1076_v51  ;;  %1632 = vmatprep.mubr.msk.f32.mxu0 %vm713_vm2, %v2088_v12 }
 0x2de   : > { %v1716_v52 = vpop.eup %1715 }
 0x2df   : > { %1641 = vmatprep.mubr.msk.f32.mxu1 %vm713_vm2, %v1716_v52  ;;  %v1073_v54 = vsel %vm713_vm2, %v1716_v52, 0.0  ;;  %1633 = vmatmul.mubr.msk.f32.vlgmr.msra.gmra.mxu0 %vm713_vm2, %v2072_v1 }
 0x2e0   : > { %766 = vadd.xlane.f32.xlu1 %v765_v53  ;;  %1074 = vadd.xlane.f32.xlu0 %v1073_v54 }
 0x2e1   : > { %1642 = vmatmul.mubr.msk.f32.gmra.mxu1 %vm713_vm2, %v1714_v50 }
 0x2e4   : > { %772 = vadd.xlane.f32.xlu1 %v771_v19  ;;  %763 = vadd.xlane.f32.xlu0 %v762_v20 }
 0x2e8   : > { %778 = vadd.xlane.f32.xlu1 %v777_v55  ;;  %769 = vadd.xlane.f32.xlu0 %v768_v60 }
 0x2ec   : > { %784 = vadd.xlane.f32.xlu1 %v783_v57  ;;  %775 = vadd.xlane.f32.xlu0 %v774_v2 }
 0x2f0   : > { %781 = vadd.xlane.f32.xlu0 %v780_v58 }
 0x348   : > { %v1060_v59 = vpop.xlane.xlu0 %1059 }
 0x34d   : > { %v1057_v8 = vpop.xlane.xlu1 %1056 }
 0x351   : > { %v1066_v61 = vpop.xlane.xlu1 %1065 }
 0x352   : > { %1717 = vrcp.f32 %v1066_v61 }
 0x358   : > { %v1063_v62 = vpop.xlane.xlu0 %1062 }
 0x359   : > { %1719 = vrcp.f32 %v1063_v62 }
 0x35e   : > { %v1072_v22 = vpop.xlane.xlu1 %1071 }
 0x35f   : > { %1721 = vrcp.f32 %v1072_v22  ;;  %v1718_v7 = vpop.eup %1717 }
 0x361   : > { %v1069_v1 = vpop.xlane.xlu0 %1068 }
 0x362   : > { %1723 = vrcp.f32 %v1069_v1 }
 0x363   : > { %1725 = vrcp.f32 %v1060_v59 }
 0x364   : > { %1727 = vrcp.f32 %v1057_v8 }
 0x365   : > { %v1078_v4 = vpop.xlane.xlu1 %1077 }
 0x366   : > { %1729 = vrcp.f32 %v1078_v4  ;;  %v1720_v9 = vpop.eup %1719 }
 0x369   : > { %v1075_v40 = vpop.xlane.xlu0 %1074  ;;  %v767_v30 = vpop.xlane.xlu1 %766 }
 0x36a   : > { %1731 = vrcp.f32 %v1075_v40 }
 0x36c   : > { %v1722_v63 = vpop.eup %1721 }
 0x36d   : > { %v764_v35 = vpop.xlane.xlu0 %763  ;;  %v773_v37 = vpop.xlane.xlu1 %772 }
 0x36e   : > { %1733 = vrcp.f32 %v773_v37 }
 0x36f   : > { %v1724_v17 = vpop.eup %1723 }
 0x370   : > { %v1726_v26 = vpop.eup %1725 }
 0x371   : > { %v1728_v28 = vpop.eup %1727  ;;  %v770_v39 = vpop.xlane.xlu0 %769 }
 0x372   : > { %v779_v41 = vpop.xlane.xlu1 %778  ;;  %1735 = vrcp.f32 %v770_v39 }
 0x373   : > { %v1730_v32 = vpop.eup %1729  ;;  %1737 = vrcp.f32 %v779_v41 }
 0x375   : > { %v776_v44 = vpop.xlane.xlu0 %775 }
 0x376   : > { %1739 = vrcp.f32 %v776_v44  ;;  %v785_v38 = vpop.xlane.xlu1 %784 }
 0x377   : > { %v1732_v31 = vpop.eup %1731  ;;  %1741 = vrcp.f32 %v767_v30 }
 0x378   : > { %1743 = vrcp.f32 %v764_v35 }
 0x379   : > { %v782_v45 = vpop.xlane.xlu0 %781  ;;  %1745 = vrcp.f32 %v785_v38 }
 0x37a   : > { %1747 = vrcp.f32 %v782_v45 }
 0x37b   : > { %v1734_v36 = vpop.eup %1733 }
 0x37f   : > { %v1736_v49 = vpop.eup %1735 }
 0x380   : > { %v2143_v0 = vpop.f32.mrf.mxu0  ;;  %v1738_v53 = vpop.eup %1737 }
 0x382   : > { %v2145_v13 = vpop.f32.mrf.mxu0 }
 0x383   : > { %v1740_v60 = vpop.eup %1739 }
 0x384   : > { %v1742_v62 = vpop.eup %1741 }
 0x385   : > { %v1744_v1 = vpop.eup %1743 }
 0x386   : > { %v931_v4 = vmul.f32 %v1744_v1, %v2145_v13 }
 0x38a   : > { %v2147_v3 = vpop.f32.mrf.mxu0 }
 0x38b   : > { %v934_v46 = vmul.f32 %v1734_v36, %v2147_v3 }
 0x38c   : > { %v2149_v25 = vpop.f32.mrf.mxu0 }
 0x38d   : > { %v933_v51 = vmul.f32 %v1736_v49, %v2149_v25  ;;  %v932_v25 = vmul.f32 %v1742_v62, %v2143_v0 }
 0x393   : > { %v2151_v5 = vpop.f32.mrf.mxu0 }
 0x394   : > { %v936_v20 = vmul.f32 %v1738_v53, %v2151_v5 }
 0x395   : > { %v2153_v10 = vpop.f32.mrf.mxu0 }
 0x396   : > { %v935_v58 = vmul.f32 %v1740_v60, %v2153_v10 }
 0x397   : > { %v1637_v56 = vpop.f32.mrf.mxu1 }
 0x398   : > { %v1251_v48 = vmul.f32 %v1718_v7, %v1637_v56  ;;  %v1746_v7 = vpop.eup %1745 }
 0x399   : > { %v1203_v12 = vpop.f32.mrf.mxu1 }
 0x39a   : > { %v1250_v14 = vmul.f32 %v1720_v9, %v1203_v12  ;;  %1270 = vrot.lane.b32.xlu0 %v1251_v48, %s1762_s28  ;;  %v1748_v9 = vpop.eup %1747 }
 0x39b   : > { %v1640_v15 = vpop.f32.mrf.mxu1  ;;  %v2155_v16 = vpop.f32.mrf.mxu0 }
 0x39c   : > { %v1253_v6 = vmul.f32 %v1722_v63, %v1640_v15  ;;  %1268 = vrot.lane.b32.xlu1 %v1250_v14, %s1762_s28  ;;  %v938_v14 = vmul.f32 %v1746_v7, %v2155_v16 }
 0x39d   : > { %v1213_v18 = vpop.f32.mrf.mxu1  ;;  %v2157_v21 = vpop.f32.mrf.mxu0 }
 0x39e   : > { %v1252_v24 = vmul.f32 %v1724_v17, %v1213_v18  ;;  %1274 = vrot.lane.b32.xlu0 %v1253_v6, %s1762_s28  ;;  %v937_v0 = vmul.f32 %v1748_v9, %v2157_v21 }
 0x39f   : > { %v1634_v27 = vpop.f32.mrf.mxu0 }
 0x3a0   : > { %1272 = vrot.lane.b32.xlu1 %v1252_v24, %s1762_s28  ;;  %v1249_v11 = vmul.f32 %v1726_v26, %v1634_v27 }
 0x3a1   : > { %v1643_v42 = vpop.f32.mrf.mxu1  ;;  %v1193_v43 = vpop.f32.mrf.mxu0 }
 0x3a2   : > { %v1248_v23 = vmul.f32 %v1728_v28, %v1193_v43  ;;  %v1255_v33 = vmul.f32 %v1730_v32, %v1643_v42 }
 0x3a3   : > { %v1223_v29 = vpop.f32.mrf.mxu1 }
 0x3a4   : > { %1266 = vrot.lane.b32.xlu1 %v1249_v11, %s1762_s28  ;;  %1264 = vrot.lane.b32.xlu0 %v1248_v23, %s1762_s28  ;;  %v1254_v34 = vmul.f32 %v1732_v31, %v1223_v29 }
 0x3a8   : > { %1276 = vrot.lane.b32.xlu1 %v1254_v34, %s1762_s28  ;;  %1278 = vrot.lane.b32.xlu0 %v1255_v33, %s1762_s28 }
 0x40c   : > { %v1271_v50 = vpop.permute.xlu0 %1270 }
 0x40d   : > { %v1292_v52 = vsel %vm1288_vm3, %v934_v46, %v1271_v50 }
 0x40e   : > { %v1307_v54 = vadd.f32 %v1439_v47, %v1292_v52  ;;  %v1269_v19 = vpop.permute.xlu1 %1268 }
 0x40f   : > { %v1291_v55 = vsel %vm1288_vm3, %v933_v51, %v1269_v19 }
 0x410   : > { %1315 = vst.msk [vmem:[%s2168_s10 + $0x18] sm:$0xff] %vm284_vm0, %v1307_v54  ;;  %v1306_v57 = vadd.f32 %v1439_v47, %v1291_v55  ;;  %v1275_v2 = vpop.permute.xlu0 %1274 }
 0x411   : > { %v1294_v8 = vsel %vm1288_vm3, %v936_v20, %v1275_v2 }
 0x412   : > { %1314 = vst.msk [vmem:[%s2168_s10 + $0x10] sm:$0xff] %vm284_vm0, %v1306_v57  ;;  %v1309_v59 = vadd.f32 %v1439_v47, %v1294_v8  ;;  %v1273_v61 = vpop.permute.xlu1 %1272 }
 0x413   : > { %v1293_v22 = vsel %vm1288_vm3, %v935_v58, %v1273_v61 }
 0x414   : > { %1317 = vst.msk [vmem:[%s2168_s10 + $0x28] sm:$0xff] %vm284_vm0, %v1309_v59  ;;  %v1308_v3 = vadd.f32 %v1439_v47, %v1293_v22 }
 0x416   : > { %1316 = vst.msk [vmem:[%s2168_s10 + $0x20] sm:$0xff] %vm284_vm0, %v1308_v3  ;;  %v1267_v40 = vpop.permute.xlu1 %1266  ;;  %v1265_v5 = vpop.permute.xlu0 %1264 }
 0x417   : > { %v1290_v56 = vsel %vm1288_vm3, %v932_v25, %v1267_v40  ;;  %v1289_v48 = vsel %vm1288_vm3, %v931_v4, %v1265_v5 }
 0x418   : > { %v1305_v10 = vadd.f32 %v1439_v47, %v1290_v56  ;;  %v1304_v12 = vadd.f32 %v1439_v47, %v1289_v48 }
 0x41a   : > { %1313 = vst.msk [vmem:[%s2168_s10 + $0x8] sm:$0xff] %vm284_vm0, %v1305_v10  ;;  %1312 = vst.msk [vmem:[%s2168_s10] sm:$0xff] %vm284_vm0, %v1304_v12  ;;  %v1277_v13 = vpop.permute.xlu1 %1276  ;;  %v1279_v63 = vpop.permute.xlu0 %1278 }
 0x41b   : > { %v1295_v15 = vsel %vm1288_vm3, %v937_v0, %v1277_v13  ;;  %v1296_v6 = vsel %vm1288_vm3, %v938_v14, %v1279_v63 }
 0x41c   : > { %v1310_v17 = vadd.f32 %v1439_v47, %v1295_v15  ;;  %v1311_v18 = vadd.f32 %v1439_v47, %v1296_v6 }
 0x41e   : > { %1318 = vst.msk [vmem:[%s2168_s10 + $0x30] sm:$0xff] %vm284_vm0, %v1310_v17  ;;  %1319 = vst.msk [vmem:[%s2168_s10 + $0x38] sm:$0xff] %vm284_vm0, %v1311_v18 }
 0x41f PF: > { %s16_s21 = sadd.s32 1, %s1755_s21  }
 0x420   : > { %p13_p4 = scmp.ge.s32.totalorder %s16_s21, 10  }
 0x422   :  { %15 = sbr.rel (!%p13_p4) target bundleno = 1 (0x1), region = 77 }

</bundles_post_ra>
